<compile_context>
chip_gen: v7x
topology: tpu7x:2x2x1
jax: 0.10.0
libtpu: 0.0.40
codegen_flags: <defaults>
</compile_context>

<pallas_src>
import jax
import jax.numpy as jnp
from jax.experimental import pallas as pl
from jax.experimental.pallas import tpu as pltpu

# ---------------------------------------------------------------------------
# Synthetic region sizes (deterministic, small).
# ---------------------------------------------------------------------------
CNT = {"V1": 32, "V2": 32, "V3": 16, "V3A": 16, "V3B": 16, "V4": 16, "LatOcc": 32}
REGION_ORDER = ("V1", "V2", "V3", "V3A", "V3B", "V4", "LatOcc")
OUT_FEATURES = 32
COMPUTE_DTYPE = jnp.bfloat16   # streaming/matmul dtype; accumulation is f32


def cnt(*names):
    return sum(CNT[n] for n in names)


_OFFS = {}
_o = 0
for _name in REGION_ORDER:
    _OFFS[_name] = _o
    _o += CNT[_name]
TOTAL_FEATURES = _o  # 160

_N_V1, _N_V2 = cnt("V1"), cnt("V2")
_N3, _N3A, _N3B, _N4 = cnt("V3"), cnt("V3A"), cnt("V3B"), cnt("V4")
_N_LAT = cnt("LatOcc")
_N_S1 = _N3 + _N3A + _N3B                 # 48 (stage-1 output width)

# Column layout of the fused spike-path weight / its f32 result.
_C_S1 = 0                                  # stage-1 preact        [  0,  48)
_C_S2 = _C_S1 + _N_S1                      # stage-2 spike part    [ 48,  80)
_C_S3 = _C_S2 + _N_V2                      # stage-3 spike part    [ 80, 112)
_C_S4 = 128                                # stage-4 spike part    [128, 160)
_N_COLS = _C_S4 + OUT_FEATURES             # 160 (cols 112..128 are zero pad)


def _round_up(x, m):
    return ((x + m - 1) // m) * m


# ---------------------------------------------------------------------------
# Pallas kernel: entire backward-emulator chain fused on one batch tile.
# ---------------------------------------------------------------------------
def _emulator_kernel(spike_ref, w_spike_ref, w2c_ref, w1c_ref, wcc_ref,
                     bias_ref, out_ref):
    f32 = jnp.float32
    cd = COMPUTE_DTYPE

    # Single fused MXU pass: all spike-dependent pre-activation contributions
    # for every stage at once (bf16 x bf16 -> f32 accumulate).
    ys = jnp.dot(spike_ref[...], w_spike_ref[...], preferred_element_type=f32)

    # Packed biases (f32), one row per stage.
    b_s1 = bias_ref[0:1, 0:_N_S1]
    b2 = bias_ref[1:2, 0:_N_V2]
    b1 = bias_ref[2:3, 0:_N_V1]
    bc = bias_ref[3:4, 0:OUT_FEATURES]

    # Stage 1 (V3|V3A|V3B): pre-activation is purely spike-dependent.
    v3 = jnp.maximum(ys[:, _C_S1:_C_S1 + _N_S1] + b_s1, 0.0).astype(cd)

    # Stage 2 (V2): chain matmul on v3 + fused spike contribution.
    y2 = jnp.dot(v3, w2c_ref[...], preferred_element_type=f32)
    v2 = jnp.maximum(y2 + ys[:, _C_S2:_C_S2 + _N_V2] + b2, 0.0).astype(cd)

    # Stage 3 (V1).
    y1 = jnp.dot(v2, w1c_ref[...], preferred_element_type=f32)
    v1 = jnp.maximum(y1 + ys[:, _C_S3:_C_S3 + _N_V1] + b1, 0.0).astype(cd)

    # Stage 4 (comb).
    yc = jnp.dot(v1, wcc_ref[...], preferred_element_type=f32)
    out_ref[...] = jnp.maximum(
        yc + ys[:, _C_S4:_C_S4 + OUT_FEATURES] + bc, 0.0).astype(out_ref.dtype)


# ---------------------------------------------------------------------------
# Wrapper-side parameter packing (done once, zero runtime cost in the kernel).
# ---------------------------------------------------------------------------
def _pack_params(params):
    (w3, b3), (w3a, b3a), (w3b, b3b), (w2, b2), (w1, b1), (wc, bc) = params

    o_v1, o_v2 = _OFFS["V1"], _OFFS["V2"]
    o_v3, o_v3a, o_v3b = _OFFS["V3"], _OFFS["V3A"], _OFFS["V3B"]
    o_v4, o_lat = _OFFS["V4"], _OFFS["LatOcc"]

    # Fused spike-path weight: rows indexed by spike feature, columns packed
    # per stage (see _C_* layout above).  All re-indexing happens here.
    w_spike = jnp.zeros((TOTAL_FEATURES, _N_COLS), jnp.float32)
    # stage-1 block (V3/V3A/V3B feed their own 16-col sub-block, V4 feeds all)
    w_spike = w_spike.at[o_v3:o_v3 + _N3, _C_S1:_C_S1 + _N3].set(w3[0:_N3])
    w_spike = w_spike.at[o_v4:o_v4 + _N4, _C_S1:_C_S1 + _N3].set(w3[_N3:])
    w_spike = w_spike.at[o_v3a:o_v3a + _N3A,
                         _C_S1 + _N3:_C_S1 + _N3 + _N3A].set(w3a[0:_N3A])
    w_spike = w_spike.at[o_v4:o_v4 + _N4,
                         _C_S1 + _N3:_C_S1 + _N3 + _N3A].set(w3a[_N3A:])
    w_spike = w_spike.at[o_v3b:o_v3b + _N3B,
                         _C_S1 + _N3 + _N3A:_C_S1 + _N_S1].set(w3b[0:_N3B])
    w_spike = w_spike.at[o_v4:o_v4 + _N4,
                         _C_S1 + _N3 + _N3A:_C_S1 + _N_S1].set(w3b[_N3B:])
    # stage-2 spike block (V2 and V4 rows of W2; the v3 rows go to the chain)
    w_spike = w_spike.at[o_v2:o_v2 + _N_V2, _C_S2:_C_S2 + _N_V2].set(w2[0:_N_V2])
    w_spike = w_spike.at[o_v4:o_v4 + _N4,
                         _C_S2:_C_S2 + _N_V2].set(w2[_N_V2 + _N_S1:])
    # stage-3 spike block (V1 rows of W1)
    w_spike = w_spike.at[o_v1:o_v1 + _N_V1, _C_S3:_C_S3 + _N_V1].set(w1[0:_N_V1])
    # stage-4 spike block (LatOcc rows of Wc)
    w_spike = w_spike.at[o_lat:o_lat + _N_LAT,
                         _C_S4:_C_S4 + OUT_FEATURES].set(wc[_N_V1:])

    # Chain weights (activation-dependent rows only).
    w2_chain = w2[_N_V2:_N_V2 + _N_S1]     # (48, 32)
    w1_chain = w1[_N_V1:]                  # (32, 32)
    wc_chain = wc[0:_N_V1]                 # (32, 32)

    # Packed biases: one f32 row per stage, zero-padded to a common width.
    bw = max(_N_S1, _N_V2, _N_V1, OUT_FEATURES)

    def pad(b):
        return jnp.pad(b, ((0, 0), (0, bw - b.shape[1])))

    b_s1 = jnp.concatenate([b3, b3a, b3b], axis=1)          # (1, 48)
    bias_pack = jnp.concatenate([pad(b_s1), pad(b2), pad(b1), pad(bc)],
                                axis=0).astype(jnp.float32)  # (4, 48)

    cd = COMPUTE_DTYPE
    return (w_spike.astype(cd), w2_chain.astype(cd), w1_chain.astype(cd),
            wc_chain.astype(cd), bias_pack)


# ---------------------------------------------------------------------------
# Wrapper
# ---------------------------------------------------------------------------
def brain_emulator_backward(spike, params, *, tb=512):
    B, F = spike.shape
    assert F == TOTAL_FEATURES

    w_spike, w2c, w1c, wcc, bias_pack = _pack_params(params)
    spike_c = spike.astype(COMPUTE_DTYPE)

    # Large batch tile by default; clamp to an 8-aligned tile for small
    # batches and zero-pad ragged batches.
    tb_eff = _round_up(min(tb, _round_up(B, 8)), 8)
    B_pad = _round_up(B, tb_eff)
    if B_pad != B:
        spike_c = jnp.pad(spike_c, ((0, B_pad - B), (0, 0)))

    def const_spec(shape):
        return pl.BlockSpec(shape, lambda i: (0, 0))

    out = pl.pallas_call(
        _emulator_kernel,
        out_shape=jax.ShapeDtypeStruct((B_pad, OUT_FEATURES), jnp.float32),
        grid=(B_pad // tb_eff,),
        in_specs=[pl.BlockSpec((tb_eff, F), lambda i: (i, 0)),
                  const_spec(w_spike.shape),
                  const_spec(w2c.shape),
                  const_spec(w1c.shape),
                  const_spec(wcc.shape),
                  const_spec(bias_pack.shape)],
        out_specs=pl.BlockSpec((tb_eff, OUT_FEATURES), lambda i: (i, 0)),
        compiler_params=pltpu.CompilerParams(
            dimension_semantics=("parallel",)),
    )(spike_c, w_spike, w2c, w1c, wcc, bias_pack)
    return out[:B]


# ---------------------------------------------------------------------------
# Deterministic parameter initialization (PyTorch-Linear-style uniform).
# Weights stored as (in, out) so the kernel computes x @ W (== x @ W_t^T).
# ---------------------------------------------------------------------------
def init_params(key):
    layer_dims = [
        (cnt("V3", "V4"), cnt("V3")),                              # self.V3
        (cnt("V3A", "V4"), cnt("V3A")),                            # self.V3A
        (cnt("V3B", "V4"), cnt("V3B")),                            # self.V3B
        (cnt("V2", "V3", "V3A", "V3B", "V4"), cnt("V2")),          # self.V2
        (cnt("V1", "V2"), cnt("V1")),                              # self.V1
        (cnt("V1", "LatOcc"), OUT_FEATURES),                       # self.comb
    ]
    params = []
    for din, dout in layer_dims:
        key, kw, kb = jax.random.split(key, 3)
        scale = 1.0 / (din ** 0.5)
        w = jax.random.uniform(kw, (din, dout), jnp.float32, -scale, scale)
        b = jax.random.uniform(kb, (1, dout), jnp.float32, -scale, scale)
        params.append((w, b))
    return params


# Pure-JAX reference that follows the original module structure (concats +
# un-fused weights) but uses the same bf16-cast inputs / weights / activations
# as the kernel so the comparison is tight.
def reference(spike, params):
    cd = COMPUTE_DTYPE

    def region(name):
        o = _OFFS[name]
        return spike[:, o:o + CNT[name]]

    def hidden(x, p):
        y = jnp.dot(x.astype(cd), p[0].astype(cd),
                    preferred_element_type=jnp.float32) + p[1]
        return jnp.maximum(y, 0.0)

    p3, p3a, p3b, p2, p1, pc = params
    V1 = region("V1"); V2 = region("V2"); V3 = region("V3")
    V3A = region("V3A"); V3B = region("V3B"); V4 = region("V4")
    LatOcc = region("LatOcc")
    v3 = jnp.concatenate(
        [hidden(jnp.concatenate([V3, V4], axis=1), p3),
         hidden(jnp.concatenate([V3A, V4], axis=1), p3a),
         hidden(jnp.concatenate([V3B, V4], axis=1), p3b)], axis=1)
    v2 = hidden(jnp.concatenate([V2.astype(jnp.float32),
                                 v3, V4.astype(jnp.float32)], axis=1), p2)
    v1 = hidden(jnp.concatenate([V1.astype(jnp.float32), v2], axis=1), p1)
    return hidden(jnp.concatenate([v1, LatOcc.astype(jnp.float32)], axis=1), pc)


if __name__ == "__main__":
    key = jax.random.PRNGKey(0)
    key, kp, kx = jax.random.split(key, 3)
    params = init_params(kp)

    B = 250  # intentionally ragged to exercise the padding path
    spike = jax.random.normal(kx, (B, TOTAL_FEATURES), jnp.float32)

    out = brain_emulator_backward(spike, params, tb=64)   # grid=(4,)
    out = jax.block_until_ready(out)

    ref = reference(spike, params)
    assert out.shape == (B, OUT_FEATURES)
    assert jnp.allclose(out, ref, atol=2e-3, rtol=2e-3), float(
        jnp.max(jnp.abs(out - ref)))
    print("KERNEL_OK")
</pallas_src>

<mosaic_0001>
module attributes {stable_mosaic.version = 11 : i64} {
  func.func @_emulator_kernel(%arg0: i32, %arg1: memref<64x160xbf16, #tpu.memory_space<vmem>>, %arg2: memref<160x160xbf16, #tpu.memory_space<vmem>>, %arg3: memref<48x32xbf16, #tpu.memory_space<vmem>>, %arg4: memref<32x32xbf16, #tpu.memory_space<vmem>>, %arg5: memref<32x32xbf16, #tpu.memory_space<vmem>>, %arg6: memref<4x48xf32, #tpu.memory_space<vmem>>, %arg7: memref<64x32xf32, #tpu.memory_space<vmem>>) attributes {dimension_semantics = [#tpu.dimension_semantics<parallel>], iteration_bounds = array<i64: 4>, scalar_prefetch = 0 : i64, scratch_operands = 0 : i64, tpu.core_type = #tpu.core_type<tc>, window_params = [{transform_indices = @transform_0, window_bounds = array<i64: 64, 160>}, {pipeline_mode = #tpu.pipeline_mode<synchronous>, transform_indices = @transform_1, window_bounds = array<i64: 160, 160>}, {pipeline_mode = #tpu.pipeline_mode<synchronous>, transform_indices = @transform_2, window_bounds = array<i64: 48, 32>}, {pipeline_mode = #tpu.pipeline_mode<synchronous>, transform_indices = @transform_3, window_bounds = array<i64: 32, 32>}, {pipeline_mode = #tpu.pipeline_mode<synchronous>, transform_indices = @transform_4, window_bounds = array<i64: 32, 32>}, {pipeline_mode = #tpu.pipeline_mode<synchronous>, transform_indices = @transform_5, window_bounds = array<i64: 4, 48>}, {transform_indices = @transform_6, window_bounds = array<i64: 64, 32>}]} {
    %c0 = arith.constant 0 : index
    %c0_0 = arith.constant 0 : index
    %0 = vector.load %arg1[%c0, %c0_0] : memref<64x160xbf16, #tpu.memory_space<vmem>>, vector<64x160xbf16>
    %c0_1 = arith.constant 0 : index
    %c0_2 = arith.constant 0 : index
    %1 = vector.load %arg2[%c0_1, %c0_2] : memref<160x160xbf16, #tpu.memory_space<vmem>>, vector<160x160xbf16>
    %cst = arith.constant dense<0.000000e+00> : vector<64x160xf32>
    %2 = tpu.matmul %0, %1, %cst {dimension_numbers = #tpu.dot_dimension_numbers<[1], [0], [0], [1], [0, 0, 1, 1], [], []>} : vector<64x160xbf16>, vector<160x160xbf16>, vector<64x160xf32> -> vector<64x160xf32>
    %c0_3 = arith.constant 0 : index
    %c0_4 = arith.constant 0 : index
    %3 = vector.load %arg6[%c0_3, %c0_4] : memref<4x48xf32, #tpu.memory_space<vmem>>, vector<1x48xf32>
    %c1 = arith.constant 1 : index
    %c0_5 = arith.constant 0 : index
    %4 = vector.load %arg6[%c1, %c0_5] : memref<4x48xf32, #tpu.memory_space<vmem>>, vector<1x32xf32>
    %c2 = arith.constant 2 : index
    %c0_6 = arith.constant 0 : index
    %5 = vector.load %arg6[%c2, %c0_6] : memref<4x48xf32, #tpu.memory_space<vmem>>, vector<1x32xf32>
    %c3 = arith.constant 3 : index
    %c0_7 = arith.constant 0 : index
    %6 = vector.load %arg6[%c3, %c0_7] : memref<4x48xf32, #tpu.memory_space<vmem>>, vector<1x32xf32>
    %7 = vector.extract_strided_slice %2 {offsets = [0, 0], sizes = [64, 48], strides = [1, 1]} : vector<64x160xf32> to vector<64x48xf32>
    %8 = vector.broadcast %3 : vector<1x48xf32> to vector<64x48xf32>
    %9 = arith.addf %7, %8 : vector<64x48xf32>
    %cst_8 = arith.constant 0.000000e+00 : f32
    %10 = vector.broadcast %cst_8 : f32 to vector<64x48xf32>
    %11 = arith.maximumf %9, %10 : vector<64x48xf32>
    %12 = arith.truncf %11 : vector<64x48xf32> to vector<64x48xbf16>
    %c0_9 = arith.constant 0 : index
    %c0_10 = arith.constant 0 : index
    %13 = vector.load %arg3[%c0_9, %c0_10] : memref<48x32xbf16, #tpu.memory_space<vmem>>, vector<48x32xbf16>
    %cst_11 = arith.constant dense<0.000000e+00> : vector<64x32xf32>
    %14 = tpu.matmul %12, %13, %cst_11 {dimension_numbers = #tpu.dot_dimension_numbers<[1], [0], [0], [1], [0, 0, 1, 1], [], []>} : vector<64x48xbf16>, vector<48x32xbf16>, vector<64x32xf32> -> vector<64x32xf32>
    %15 = vector.extract_strided_slice %2 {offsets = [0, 48], sizes = [64, 32], strides = [1, 1]} : vector<64x160xf32> to vector<64x32xf32>
    %16 = arith.addf %14, %15 : vector<64x32xf32>
    %17 = vector.broadcast %4 : vector<1x32xf32> to vector<64x32xf32>
    %18 = arith.addf %16, %17 : vector<64x32xf32>
    %cst_12 = arith.constant 0.000000e+00 : f32
    %19 = vector.broadcast %cst_12 : f32 to vector<64x32xf32>
    %20 = arith.maximumf %18, %19 : vector<64x32xf32>
    %21 = arith.truncf %20 : vector<64x32xf32> to vector<64x32xbf16>
    %c0_13 = arith.constant 0 : index
    %c0_14 = arith.constant 0 : index
    %22 = vector.load %arg4[%c0_13, %c0_14] : memref<32x32xbf16, #tpu.memory_space<vmem>>, vector<32x32xbf16>
    %cst_15 = arith.constant dense<0.000000e+00> : vector<64x32xf32>
    %23 = tpu.matmul %21, %22, %cst_15 {dimension_numbers = #tpu.dot_dimension_numbers<[1], [0], [0], [1], [0, 0, 1, 1], [], []>} : vector<64x32xbf16>, vector<32x32xbf16>, vector<64x32xf32> -> vector<64x32xf32>
    %24 = vector.extract_strided_slice %2 {offsets = [0, 80], sizes = [64, 32], strides = [1, 1]} : vector<64x160xf32> to vector<64x32xf32>
    %25 = arith.addf %23, %24 : vector<64x32xf32>
    %26 = vector.broadcast %5 : vector<1x32xf32> to vector<64x32xf32>
    %27 = arith.addf %25, %26 : vector<64x32xf32>
    %cst_16 = arith.constant 0.000000e+00 : f32
    %28 = vector.broadcast %cst_16 : f32 to vector<64x32xf32>
    %29 = arith.maximumf %27, %28 : vector<64x32xf32>
    %30 = arith.truncf %29 : vector<64x32xf32> to vector<64x32xbf16>
    %c0_17 = arith.constant 0 : index
    %c0_18 = arith.constant 0 : index
    %31 = vector.load %arg5[%c0_17, %c0_18] : memref<32x32xbf16, #tpu.memory_space<vmem>>, vector<32x32xbf16>
    %cst_19 = arith.constant dense<0.000000e+00> : vector<64x32xf32>
    %32 = tpu.matmul %30, %31, %cst_19 {dimension_numbers = #tpu.dot_dimension_numbers<[1], [0], [0], [1], [0, 0, 1, 1], [], []>} : vector<64x32xbf16>, vector<32x32xbf16>, vector<64x32xf32> -> vector<64x32xf32>
    %33 = vector.extract_strided_slice %2 {offsets = [0, 128], sizes = [64, 32], strides = [1, 1]} : vector<64x160xf32> to vector<64x32xf32>
    %34 = arith.addf %32, %33 : vector<64x32xf32>
    %35 = vector.broadcast %6 : vector<1x32xf32> to vector<64x32xf32>
    %36 = arith.addf %34, %35 : vector<64x32xf32>
    %cst_20 = arith.constant 0.000000e+00 : f32
    %37 = vector.broadcast %cst_20 : f32 to vector<64x32xf32>
    %38 = arith.maximumf %36, %37 : vector<64x32xf32>
    %c0_21 = arith.constant 0 : index
    %c0_22 = arith.constant 0 : index
    %39 = vector.load %arg7[%c0_21, %c0_22] : memref<64x32xf32, #tpu.memory_space<vmem>>, vector<64x32xf32>
    tpu.vector_store %arg7[%c0_21, %c0_22], %38 {strides = array<i32>} : memref<64x32xf32, #tpu.memory_space<vmem>>, vector<64x32xf32>,
    return
  }
  func.func @transform_0(%arg0: i32) -> (i32, i32) {
    %c0_i32 = arith.constant 0 : i32
    %c0_i32_0 = arith.constant 0 : i32
    return %arg0, %c0_i32 : i32, i32
  }
  func.func @transform_1(%arg0: i32) -> (i32, i32) {
    %c0_i32 = arith.constant 0 : i32
    %c0_i32_0 = arith.constant 0 : i32
    %c0_i32_1 = arith.constant 0 : i32
    return %c0_i32, %c0_i32_0 : i32, i32
  }
  func.func @transform_2(%arg0: i32) -> (i32, i32) {
    %c0_i32 = arith.constant 0 : i32
    %c0_i32_0 = arith.constant 0 : i32
    %c0_i32_1 = arith.constant 0 : i32
    return %c0_i32, %c0_i32_0 : i32, i32
  }
  func.func @transform_3(%arg0: i32) -> (i32, i32) {
    %c0_i32 = arith.constant 0 : i32
    %c0_i32_0 = arith.constant 0 : i32
    %c0_i32_1 = arith.constant 0 : i32
    return %c0_i32, %c0_i32_0 : i32, i32
  }
  func.func @transform_4(%arg0: i32) -> (i32, i32) {
    %c0_i32 = arith.constant 0 : i32
    %c0_i32_0 = arith.constant 0 : i32
    %c0_i32_1 = arith.constant 0 : i32
    return %c0_i32, %c0_i32_0 : i32, i32
  }
  func.func @transform_5(%arg0: i32) -> (i32, i32) {
    %c0_i32 = arith.constant 0 : i32
    %c0_i32_0 = arith.constant 0 : i32
    %c0_i32_1 = arith.constant 0 : i32
    return %c0_i32, %c0_i32_0 : i32, i32
  }
  func.func @transform_6(%arg0: i32) -> (i32, i32) {
    %c0_i32 = arith.constant 0 : i32
    %c0_i32_0 = arith.constant 0 : i32
    return %arg0, %c0_i32 : i32, i32
  }
}

</mosaic_0001>

<bundles_post_ra>
// kernel: tpu_custom_call.1
= control target key start
LH: loop header
LB: loop body
LE: loop exit
PB: predicated region body
PF: predicated region fallthrough
CT: control target
= control target key end

     0   :  { %s1242_s21 = smov 0   ;;  %s1435_s0 = inlined_call_operand.vmem [shape: bf16[256,160], index: 0, kind: input, shape index: {}]   ;;  %s1436_s1 = inlined_call_operand.vmem [shape: bf16[160,160], index: 1, kind: input, shape index: {}]   ;;  %s1437_s2 = inlined_call_operand.vmem [shape: bf16[48,32], index: 2, kind: input, shape index: {}]   ;;  %s1438_s3 = inlined_call_operand.vmem [shape: bf16[32,32], index: 3, kind: input, shape index: {}]   ;;  %s1439_s4 = inlined_call_operand.vmem [shape: bf16[32,32], index: 4, kind: input, shape index: {}]   ;;  %s1440_s5 = inlined_call_operand.vmem [shape: f32[4,48], index: 5, kind: input, shape index: {}]   ;;  %s1441_s6 = inlined_call_operand.vmem [shape: f32[256,32], index: 6, kind: output, shape index: {}]  }
   0x1 LB: > { %s1013_s22 = sadd.s32 4294967295, %s1203_s21   ;;  %p1017_p0 = scmp.ge.s32.totalorder %s1203_s21, 1  ;;  %s1203_s21 = sphi %s1242_s21, %s16_s21  }
   0x2   : > { %p214_p1 = scmp.lt.s32.totalorder %s1203_s21, 5 }
   0x4   : > { %p215_p2 = pnand %p1017_p0, %p214_p1 }
   0x5   : > { %v1148_v0 = vld [vmem:[%s1436_s1 + $0x4] ss:$8 sps:$4 sm:$0xff] (!%p215_p2)   ;;  %s1018_s25 = sshll.u32 (!%p215_p2), %s1013_s22, 3  ;;  %v1150_v1 = vld [vmem:[%s1436_s1] ss:$8 sps:$4 sm:$0xff] (!%p215_p2)   ;;  %vm423_vm0 = vcmask (!%p215_p2), 261120  }
   0x6   : > { %218 = sbr.rel (%p215_p2) target bundleno = 960 (0x3c0), region = 44  ;;  %p246_p3 = scmp.lt.s32.totalorder (!%p215_p2), %s1018_s25, 31  ;;  %436 = vmatprep.subr.bf16.mxu0 (!%p215_p2), %v1148_v0  ;;  %v1151_v2 = vld [vmem:[%s1436_s1 + $0x14] ss:$8 sps:$4 sm:$0xff] (!%p215_p2)   ;;  %v1153_v3 = vld [vmem:[%s1436_s1 + $0x10] ss:$8 sps:$4 sm:$0xff] (!%p215_p2)  }
   0x7   : > { %437 = vmatpush1.bf16.msra.mxu0 (!%p215_p2), %v1150_v1  ;;  %v1154_v4 = vld [vmem:[%s1436_s1 + $0x24] ss:$8 sps:$4 sm:$0xff] (!%p215_p2)   ;;  %v1156_v5 = vld [vmem:[%s1436_s1 + $0x20] ss:$8 sps:$4 sm:$0xff] (!%p215_p2)   ;;  %v1157_v6 = vld [vmem:[%s1436_s1 + $0x34] ss:$8 sps:$4 sm:$0xff] (!%p215_p2)  }
   0x8   : > { %438 = vmatprep.subr.bf16.mxu0 (!%p215_p2), %v1151_v2  ;;  %v1159_v7 = vld [vmem:[%s1436_s1 + $0x30] ss:$8 sps:$4 sm:$0xff] (!%p215_p2)   ;;  %v1160_v8 = vld [vmem:[%s1436_s1 + $0x44] ss:$8 sps:$4 sm:$0xff] (!%p215_p2)   ;;  %v1162_v10 = vld [vmem:[%s1436_s1 + $0x40] ss:$8 sps:$4 sm:$0xff] (!%p215_p2)  }
   0x9   : > { %v1163_v11 = vld [vmem:[%s1436_s1 + $0x54] ss:$8 sps:$4 sm:$0xff] (!%p215_p2)   ;;  %v1165_v12 = vld [vmem:[%s1436_s1 + $0x50] ss:$8 sps:$4 sm:$0xff] (!%p215_p2)   ;;  %v1166_v13 = vld [vmem:[%s1436_s1 + $0x64] ss:$8 sps:$4 sm:$0xff] (!%p215_p2)  }
   0xa   : > { %v1168_v14 = vld [vmem:[%s1436_s1 + $0x60] ss:$8 sps:$4 sm:$0xff] (!%p215_p2)   ;;  %v1169_v15 = vld [vmem:[%s1436_s1 + $0x74] ss:$8 sps:$4 sm:$0xff] (!%p215_p2)   ;;  %v1171_v16 = vld [vmem:[%s1436_s1 + $0x70] ss:$8 sps:$4 sm:$0xff] (!%p215_p2)  }
   0xb   : > { %439 = vmatpush1.bf16.msra.mxu0 (!%p215_p2), %v1153_v3  ;;  %v1172_v17 = vld [vmem:[%s1436_s1 + $0x84] ss:$8 sps:$4 sm:$0xff] (!%p215_p2)   ;;  %v1174_v18 = vld [vmem:[%s1436_s1 + $0x80] ss:$8 sps:$4 sm:$0xff] (!%p215_p2)   ;;  %v1175_v19 = vld [vmem:[%s1436_s1 + $0x94] ss:$8 sps:$4 sm:$0xff] (!%p215_p2)  }
   0xc   : > { %440 = vmatprep.subr.bf16.mxu0 (!%p215_p2), %v1154_v4  ;;  %v1177_v20 = vld [vmem:[%s1436_s1 + $0x90] ss:$8 sps:$4 sm:$0xff] (!%p215_p2)   ;;  %v1190_v28 = vld [vmem:[%s1437_s2] sm:$0xff] (!%p215_p2)   ;;  %v1191_v29 = vld [vmem:[%s1437_s2 + $0x8] sm:$0xff] (!%p215_p2)   ;;  %s1205_s9 = smov (!%p215_p2), 80   ;;  %vm593_vm1 = vcmask (!%p215_p2), 392192  }
   0xd   : > { %s1443_s25 = smov (!%p246_p3, %s1018_s25), 31  ;;  %1100 = vmatprep.subr.bf16.mxu1 %v1190_v28  ;;  %v1192_v30 = vld [vmem:[%s1437_s2 + $0x10] sm:$0xff]   ;;  %v1055_v31 = vld [vmem:[%s1440_s5] ss:$0 sm:$0xff]  ;;  %s1206_s10 = smov 48  }
   0xe   : > { %s1080_s14 = sshll.u32 %s1443_s25, 3  ;;  %1101 = vmatpush3.bf16.msra.mxu1 %v1190_v28  ;;  %v1193_v4 = vld [vmem:[%s1438_s3] sm:$0xff]  }
   0xf   : > { %441 = vmatpush1.bf16.msra.mxu0 %v1156_v5  ;;  %s1282_s19 = scalar_lea.vmem %s1435_s0, %s1080_s14  ;;  %1102 = vmatprep.subr.bf16.mxu1 %v1191_v29  ;;  %v1194_v5 = vld [vmem:[%s1438_s3 + $0x8] sm:$0xff]   ;;  %s1409_s7 = scalar_lea.vmem %s1441_s6, %s1080_s14 }
  0x10   : > { %442 = vmatprep.subr.bf16.mxu0 %v1157_v6  ;;  %v1180_v9 = vld [vmem:[%s1282_s19 + $0x4] ss:$8 sps:$4 sm:$0xff]   ;;  %v1178_v21 = vld [vmem:[%s1282_s19] ss:$8 sps:$4 sm:$0xff]   ;;  %v1181_v22 = vld [vmem:[%s1282_s19 + $0x14] ss:$8 sps:$4 sm:$0xff]  }
  0x11   : > { %1051 = vmatprep.mubr.msk.bf16.mxu0 %vm423_vm0, %v1180_v9  ;;  %v1183_v23 = vld [vmem:[%s1282_s19 + $0x10] ss:$8 sps:$4 sm:$0xff]   ;;  %v1184_v24 = vld [vmem:[%s1282_s19 + $0x24] ss:$8 sps:$4 sm:$0xff]   ;;  %v1186_v25 = vld [vmem:[%s1282_s19 + $0x20] ss:$8 sps:$4 sm:$0xff]  }
  0x12   : > { %v1187_v26 = vld [vmem:[%s1282_s19 + $0x34] ss:$8 sps:$4 sm:$0xff]   ;;  %v1189_v27 = vld [vmem:[%s1282_s19 + $0x30] ss:$8 sps:$4 sm:$0xff]   ;;  %1103 = vmatpush3.bf16.msra.mxu1 %v1191_v29 }
  0x13   : > { %443 = vmatpush1.bf16.msra.mxu0 %v1159_v7  ;;  %1104 = vmatprep.subr.bf16.mxu1 %v1192_v30 }
  0x14   : > { %444 = vmatprep.subr.bf16.mxu0 %v1160_v8  ;;  %v1063_v8 = vld [vmem:[%s1440_s5 + $0x1] ss:$0 sm:$0xff] }
  0x16   : > { %1105 = vmatpush3.bf16.msra.mxu1 %v1192_v30 }
  0x17   : > { %445 = vmatpush1.bf16.msra.mxu0 %v1162_v10  ;;  %1114 = vmatprep.subr.bf16.mxu1 %v1193_v4 }
  0x18   : > { %446 = vmatprep.subr.bf16.mxu0 %v1163_v11 }
  0x1b   : > { %447 = vmatpush1.bf16.msra.mxu0 %v1165_v12 }
  0x1c   : > { %448 = vmatprep.subr.bf16.mxu0 %v1166_v13 }
  0x1f   : > { %449 = vmatpush1.bf16.msra.mxu0 %v1168_v14 }
  0x20   : > { %450 = vmatprep.subr.bf16.mxu0 %v1169_v15 }
  0x23   : > { %451 = vmatpush1.bf16.msra.mxu0 %v1171_v16 }
  0x24   : > { %452 = vmatprep.subr.bf16.mxu0 %v1172_v17 }
  0x27   : > { %453 = vmatpush1.bf16.msra.mxu0 %v1174_v18 }
  0x28   : > { %454 = vmatprep.subr.bf16.mxu0 %v1175_v19 }
  0x2b   : > { %455 = vmatpush1.bf16.msra.mxu0 %v1177_v20 }
  0x2e   : > { %469 = vmatmul.mubr.bf16.vlgmr.msra.gmra.mrb[0].mxu0 %v1178_v21 }
  0x2f   : > { %1052 = vmatprep.mubr.msk.bf16.mxu0 %vm423_vm0, %v1181_v22 }
  0x36   : > { %479 = vmatmul.mubr.bf16.gmra.mrb[4].mxu0 %v1183_v23 }
  0x37   : > { %1053 = vmatprep.mubr.msk.bf16.mxu0 %vm423_vm0, %v1184_v24 }
  0x3e   : > { %489 = vmatmul.mubr.bf16.gmra.mrb[8].mxu0 %v1186_v25 }
  0x3f   : > { %1054 = vmatprep.mubr.msk.bf16.mxu0 %vm423_vm0, %v1187_v26 }
  0x46   : > { %499 = vmatmul.mubr.bf16.gmra.mrb[12].mxu0 %v1189_v27 }
 0x101   : > { %v470_v32 = vpop.f32.mrb[0].mxu0 }
 0x102   : > { %v517_v33 = vadd.f32 %v1055_v31, %v470_v32  ;;  %569 = vrot.lane.b32.xlu0 %v470_v32, %s1205_s9  ;;  %v1345_v34 = vpop.f32.mrb[1].mxu0 }
 0x103   : > { %v474_v35 = vpop.f32.mrb[2].mxu0 }
 0x104   : > { %v518_v36 = vadd.f32 %v1055_v31, %v474_v35  ;;  %v1347_v37 = vpop.f32.mrb[3].mxu0  ;;  %v525_v38 = vmax.f32 %v517_v33, 0.0 }
 0x106   : > { %571 = vrot.lane.b32.xlu0 %v474_v35, %s1205_s9  ;;  %v526_v39 = vmax.f32 %v518_v36, 0.0 }
 0x108   : > { %v533_v40 = vpack.c.bf16 %v526_v39, %v525_v38 }
 0x109   : > { %v480_v41 = vpop.f32.mrb[4].mxu0 }
 0x10a   : > { %v519_v42 = vadd.f32 %v1055_v31, %v480_v41  ;;  %1106 = vmatprep.mubr.msk.bf16.mxu1 %vm593_vm1, %v533_v40  ;;  %573 = vrot.lane.b32.xlu1 %v480_v41, %s1205_s9  ;;  %v1352_v43 = vpop.f32.mrb[5].mxu0 }
 0x10b   : > { %v484_v44 = vpop.f32.mrb[6].mxu0 }
 0x10c   : > { %v520_v45 = vadd.f32 %v1055_v31, %v484_v44  ;;  %v1354_v46 = vpop.f32.mrb[7].mxu0  ;;  %v527_v47 = vmax.f32 %v519_v42, 0.0 }
 0x10e   : > { %v528_v48 = vmax.f32 %v520_v45, 0.0  ;;  %575 = vrot.lane.b32.xlu1 %v484_v44, %s1205_s9 }
 0x110   : > { %v534_v49 = vpack.c.bf16 %v528_v48, %v527_v47 }
 0x111   : > { %v490_v50 = vpop.f32.mrb[8].mxu0 }
 0x112   : > { %v521_v51 = vadd.f32 %v1055_v31, %v490_v50  ;;  %1107 = vmatmul.mubr.msk.bf16.vlgmr.msra.gmra.mrb[0].mxu1 %vm593_vm1, %v534_v49  ;;  %577 = vrot.lane.b32.xlu0 %v490_v50, %s1205_s9  ;;  %v1359_v52 = vpop.f32.mrb[9].mxu0 }
 0x113   : > { %v494_v53 = vpop.f32.mrb[10].mxu0  ;;  %1115 = vmatpush3.bf16.msra.mxu1 %v1193_v4 }
 0x114   : > { %v522_v54 = vadd.f32 %v1055_v31, %v494_v53  ;;  %579 = vrot.lane.b32.xlu1 %v494_v53, %s1205_s9  ;;  %v1362_v55 = vpop.f32.mrb[11].mxu0  ;;  %v529_v56 = vmax.f32 %v521_v51, 0.0  ;;  %1116 = vmatprep.subr.bf16.mxu1 %v1194_v5 }
 0x116   : > { %v530_v57 = vmax.f32 %v522_v54, 0.0 }
 0x117   : > { %1117 = vmatpush3.bf16.msra.mxu1 %v1194_v5 }
 0x118   : > { %v535_v58 = vpack.c.bf16 %v530_v57, %v529_v56  ;;  %v1195_v57 = vld [vmem:[%s1439_s4] sm:$0xff]  }
 0x119   : > { %v500_v59 = vpop.f32.mrb[12].mxu0  ;;  %1126 = vmatprep.subr.bf16.mxu1 %v1195_v57 }
 0x11a   : > { %v523_v60 = vadd.f32 %v1055_v31, %v500_v59  ;;  %1110 = vmatprep.mubr.msk.bf16.mxu1 %vm593_vm1, %v535_v58  ;;  %581 = vrot.lane.b32.xlu0 %v500_v59, %s1205_s9  ;;  %v1366_v61 = vpop.f32.mrb[13].mxu0  ;;  %v1196_v58 = vld [vmem:[%s1439_s4 + $0x8] sm:$0xff]  }
 0x11b   : > { %v504_v62 = vpop.f32.mrb[14].mxu0 }
 0x11c   : > { %v524_v63 = vadd.f32 %v1055_v31, %v504_v62  ;;  %583 = vrot.lane.b32.xlu1 %v504_v62, %s1205_s9  ;;  %v1369_v0 = vpop.f32.mrb[15].mxu0  ;;  %v531_v1 = vmax.f32 %v523_v60, 0.0 }
 0x11e   : > { %v532_v2 = vmax.f32 %v524_v63, 0.0  ;;  %711 = vrot.lane.b32.xlu0 %v470_v32, %s1206_s10  ;;  %v1070_v63 = vld [vmem:[%s1440_s5 + $0x2] ss:$0 sm:$0xff] }
 0x120   : > { %v536_v3 = vpack.c.bf16 %v532_v2, %v531_v1  ;;  %713 = vrot.lane.b32.xlu1 %v474_v35, %s1206_s10 }
 0x122   : > { %715 = vrot.lane.b32.xlu0 %v480_v41, %s1206_s10  ;;  %1111 = vmatmul.mubr.msk.bf16.gmra.mrb[4].mxu1 %vm593_vm1, %v536_v3 }
 0x124   : > { %717 = vrot.lane.b32.xlu1 %v484_v44, %s1206_s10 }
 0x126   : > { %719 = vrot.lane.b32.xlu0 %v490_v50, %s1206_s10 }
 0x128   : > { %721 = vrot.lane.b32.xlu1 %v494_v53, %s1206_s10 }
 0x12a   : > { %723 = vrot.lane.b32.xlu0 %v500_v59, %s1206_s10 }
 0x12c   : > { %725 = vrot.lane.b32.xlu1 %v504_v62, %s1206_s10 }
 0x174   : > { %v570_v7 = vpop.permute.xlu0 %569 }
 0x178   : > { %v572_v15 = vpop.permute.xlu0 %571 }
 0x17c   : > { %v574_v6 = vpop.permute.xlu1 %573 }
 0x180   : > { %v576_v12 = vpop.permute.xlu1 %575 }
 0x184   : > { %v578_v29 = vpop.permute.xlu0 %577 }
 0x186   : > { %v580_v30 = vpop.permute.xlu1 %579 }
 0x18c   : > { %v582_v31 = vpop.permute.xlu0 %581 }
 0x18e   : > { %v584_v36 = vpop.permute.xlu1 %583 }
 0x190   : > { %v712_v59 = vpop.permute.xlu0 %711 }
 0x192   : > { %v714_v60 = vpop.permute.xlu1 %713 }
 0x194   : > { %v716_v62 = vpop.permute.xlu0 %715 }
 0x196   : > { %v718_v4 = vpop.permute.xlu1 %717 }
 0x1e5   : > { %v1108_v9 = vpop.f32.mrb[0].mxu1 }
 0x1e6   : > { %v649_v10 = vadd.f32 %v1108_v9, %v574_v6  ;;  %v640_v11 = vpop.f32.mrb[1].mxu1 }
 0x1e7   : > { %v641_v13 = vadd.f32 %v640_v11, %v570_v7  ;;  %v1109_v14 = vpop.f32.mrb[2].mxu1 }
 0x1e8   : > { %v677_v16 = vadd.f32 %v1063_v8, %v649_v10  ;;  %v652_v17 = vadd.f32 %v1109_v14, %v576_v12  ;;  %v643_v18 = vpop.f32.mrb[3].mxu1 }
 0x1e9   : > { %v675_v19 = vadd.f32 %v1063_v8, %v641_v13  ;;  %v644_v20 = vadd.f32 %v643_v18, %v572_v15 }
 0x1ea   : > { %v678_v21 = vadd.f32 %v1063_v8, %v652_v17  ;;  %v685_v23 = vmax.f32 %v677_v16, 0.0 }
 0x1eb   : > { %v676_v22 = vadd.f32 %v1063_v8, %v644_v20  ;;  %v683_v25 = vmax.f32 %v675_v19, 0.0  ;;  %v720_v19 = vpop.permute.xlu0 %719 }
 0x1ec   : > { %v686_v24 = vmax.f32 %v678_v21, 0.0  ;;  %v722_v21 = vpop.permute.xlu1 %721 }
 0x1ed   : > { %v684_v26 = vmax.f32 %v676_v22, 0.0 }
 0x1ee   : > { %v692_v27 = vpack.c.bf16 %v686_v24, %v685_v23 }
 0x1ef   : > { %v691_v28 = vpack.c.bf16 %v684_v26, %v683_v25  ;;  %v724_v22 = vpop.permute.xlu0 %723 }
 0x1f0   : > { %v726_v26 = vpop.permute.xlu1 %725 }
 0x1f1   : > { %1118 = vmatprep.mubr.msk.bf16.mxu1 %vm423_vm0, %v691_v28 }
 0x1f2   : > { %1119 = vmatmul.mubr.msk.bf16.vlgmr.msra.gmra.mrb[8].mxu1 %vm423_vm0, %v692_v27 }
 0x1f3   : > { %1127 = vmatpush3.bf16.msra.mxu1 %v1195_v57 }
 0x1f4   : > { %1128 = vmatprep.subr.bf16.mxu1 %v1196_v58 }
 0x1f5   : > { %v1112_v32 = vpop.f32.mrb[4].mxu1 }
 0x1f6   : > { %v665_v33 = vadd.f32 %v1112_v32, %v582_v31  ;;  %v656_v35 = vpop.f32.mrb[5].mxu1 }
 0x1f7   : > { %v657_v38 = vadd.f32 %v656_v35, %v578_v29  ;;  %v1113_v39 = vpop.f32.mrb[6].mxu1  ;;  %1129 = vmatpush3.bf16.msra.mxu1 %v1196_v58 }
 0x1f8   : > { %v681_v40 = vadd.f32 %v1063_v8, %v665_v33  ;;  %v668_v41 = vadd.f32 %v1113_v39, %v584_v36  ;;  %v659_v42 = vpop.f32.mrb[7].mxu1 }
 0x1f9   : > { %v679_v44 = vadd.f32 %v1063_v8, %v657_v38  ;;  %v660_v45 = vadd.f32 %v659_v42, %v580_v30 }
 0x1fa   : > { %v682_v47 = vadd.f32 %v1063_v8, %v668_v41  ;;  %v689_v49 = vmax.f32 %v681_v40, 0.0 }
 0x1fb   : > { %v680_v48 = vadd.f32 %v1063_v8, %v660_v45  ;;  %v687_v51 = vmax.f32 %v679_v44, 0.0  ;;  %v1077_v45 = vld [vmem:[%s1440_s5 + $0x3] ss:$0 sm:$0xff] }
 0x1fc   : > { %v690_v50 = vmax.f32 %v682_v47, 0.0 }
 0x1fd   : > { %v688_v53 = vmax.f32 %v680_v48, 0.0 }
 0x1fe   : > { %v694_v54 = vpack.c.bf16 %v690_v50, %v689_v49 }
 0x1ff   : > { %v693_v56 = vpack.c.bf16 %v688_v53, %v687_v51 }
 0x201   : > { %1122 = vmatprep.mubr.msk.bf16.mxu1 %vm423_vm0, %v693_v56 }
 0x202   : > { %1123 = vmatmul.mubr.msk.bf16.gmra.mrb[12].mxu1 %vm423_vm0, %v694_v54 }
 0x2c5   : > { %v1120_v1 = vpop.f32.mrb[8].mxu1 }
 0x2c6   : > { %v790_v2 = vadd.f32 %v1120_v1, %v716_v62  ;;  %v781_v3 = vpop.f32.mrb[9].mxu1 }
 0x2c7   : > { %v782_v5 = vadd.f32 %v781_v3, %v712_v59  ;;  %v1121_v6 = vpop.f32.mrb[10].mxu1 }
 0x2c8   : > { %v818_v7 = vadd.f32 %v1070_v63, %v790_v2  ;;  %v793_v8 = vadd.f32 %v1121_v6, %v718_v4  ;;  %v784_v9 = vpop.f32.mrb[11].mxu1 }
 0x2c9   : > { %v816_v10 = vadd.f32 %v1070_v63, %v782_v5  ;;  %v785_v11 = vadd.f32 %v784_v9, %v714_v60 }
 0x2ca   : > { %v819_v12 = vadd.f32 %v1070_v63, %v793_v8  ;;  %v826_v14 = vmax.f32 %v818_v7, 0.0 }
 0x2cb   : > { %v817_v13 = vadd.f32 %v1070_v63, %v785_v11  ;;  %v824_v16 = vmax.f32 %v816_v10, 0.0 }
 0x2cc   : > { %v827_v15 = vmax.f32 %v819_v12, 0.0 }
 0x2cd   : > { %v825_v17 = vmax.f32 %v817_v13, 0.0 }
 0x2ce   : > { %v833_v18 = vpack.c.bf16 %v827_v15, %v826_v14 }
 0x2cf   : > { %v832_v20 = vpack.c.bf16 %v825_v17, %v824_v16 }
 0x2d1   : > { %1130 = vmatprep.mubr.msk.bf16.mxu1 %vm423_vm0, %v832_v20 }
 0x2d2   : > { %1131 = vmatmul.mubr.msk.bf16.vlgmr.msra.gmra.mrb[16].mxu1 %vm423_vm0, %v833_v18 }
 0x2d5   : > { %v1124_v23 = vpop.f32.mrb[12].mxu1 }
 0x2d6   : > { %v806_v24 = vadd.f32 %v1124_v23, %v724_v22  ;;  %v797_v25 = vpop.f32.mrb[13].mxu1 }
 0x2d7   : > { %v798_v27 = vadd.f32 %v797_v25, %v720_v19  ;;  %v1125_v28 = vpop.f32.mrb[14].mxu1 }
 0x2d8   : > { %v822_v29 = vadd.f32 %v1070_v63, %v806_v24  ;;  %v809_v30 = vadd.f32 %v1125_v28, %v726_v26  ;;  %v800_v31 = vpop.f32.mrb[15].mxu1 }
 0x2d9   : > { %v820_v32 = vadd.f32 %v1070_v63, %v798_v27  ;;  %v801_v33 = vadd.f32 %v800_v31, %v722_v21 }
 0x2da   : > { %v823_v35 = vadd.f32 %v1070_v63, %v809_v30  ;;  %v830_v38 = vmax.f32 %v822_v29, 0.0 }
 0x2db   : > { %v821_v36 = vadd.f32 %v1070_v63, %v801_v33  ;;  %v828_v40 = vmax.f32 %v820_v32, 0.0 }
 0x2dc   : > { %v831_v39 = vmax.f32 %v823_v35, 0.0 }
 0x2dd   : > { %v829_v41 = vmax.f32 %v821_v36, 0.0 }
 0x2de   : > { %v835_v42 = vpack.c.bf16 %v831_v39, %v830_v38 }
 0x2df   : > { %v834_v44 = vpack.c.bf16 %v829_v41, %v828_v40 }
 0x2e1   : > { %1134 = vmatprep.mubr.msk.bf16.mxu1 %vm423_vm0, %v834_v44 }
 0x2e2   : > { %1135 = vmatmul.mubr.msk.bf16.gmra.mrb[20].mxu1 %vm423_vm0, %v835_v42 }
 0x3a5   : > { %v1132_v47 = vpop.f32.mrb[16].mxu1 }
 0x3a6   : > { %v907_v48 = vadd.f32 %v1132_v47, %v1352_v43  ;;  %v898_v49 = vpop.f32.mrb[17].mxu1 }
 0x3a7   : > { %v899_v50 = vadd.f32 %v898_v49, %v1345_v34  ;;  %v1133_v51 = vpop.f32.mrb[18].mxu1 }
 0x3a8   : > { %v935_v53 = vadd.f32 %v1077_v45, %v907_v48  ;;  %v910_v54 = vadd.f32 %v1133_v51, %v1354_v46  ;;  %v901_v56 = vpop.f32.mrb[19].mxu1 }
 0x3a9   : > { %v933_v57 = vadd.f32 %v1077_v45, %v899_v50  ;;  %v902_v43 = vadd.f32 %v901_v56, %v1347_v37 }
 0x3aa   : > { %v943_v58 = vmax.f32 %v935_v53, 0.0  ;;  %v936_v34 = vadd.f32 %v1077_v45, %v910_v54 }
 0x3ab   : > { %v941_v59 = vmax.f32 %v933_v57, 0.0  ;;  %v934_v60 = vadd.f32 %v1077_v45, %v902_v43 }
 0x3ac   : > { %951 = vst.msk [vmem:[%s1409_s7 + $0x10] sm:$0xff] %vm423_vm0, %v943_v58  ;;  %v944_v46 = vmax.f32 %v936_v34, 0.0 }
 0x3ad   : > { %949 = vst.msk [vmem:[%s1409_s7] sm:$0xff] %vm423_vm0, %v941_v59  ;;  %v942_v62 = vmax.f32 %v934_v60, 0.0 }
 0x3ae   : > { %952 = vst.msk [vmem:[%s1409_s7 + $0x18] sm:$0xff] %vm423_vm0, %v944_v46 }
 0x3af   : > { %950 = vst.msk [vmem:[%s1409_s7 + $0x8] sm:$0xff] %vm423_vm0, %v942_v62 }
 0x3b5   : > { %v1136_v63 = vpop.f32.mrb[20].mxu1 }
 0x3b6   : > { %v923_v1 = vadd.f32 %v1136_v63, %v1366_v61  ;;  %v914_v37 = vpop.f32.mrb[21].mxu1 }
 0x3b7   : > { %v915_v2 = vadd.f32 %v914_v37, %v1359_v52  ;;  %v1137_v3 = vpop.f32.mrb[22].mxu1 }
 0x3b8   : > { %v939_v4 = vadd.f32 %v1077_v45, %v923_v1  ;;  %v926_v5 = vadd.f32 %v1137_v3, %v1369_v0  ;;  %v917_v6 = vpop.f32.mrb[23].mxu1 }
 0x3b9   : > { %v937_v7 = vadd.f32 %v1077_v45, %v915_v2  ;;  %v918_v8 = vadd.f32 %v917_v6, %v1362_v55 }
 0x3ba   : > { %v947_v9 = vmax.f32 %v939_v4, 0.0  ;;  %v940_v10 = vadd.f32 %v1077_v45, %v926_v5 }
 0x3bb   : > { %v945_v11 = vmax.f32 %v937_v7, 0.0  ;;  %v938_v12 = vadd.f32 %v1077_v45, %v918_v8 }
 0x3bc   : > { %955 = vst.msk [vmem:[%s1409_s7 + $0x30] sm:$0xff] %vm423_vm0, %v947_v9  ;;  %v948_v61 = vmax.f32 %v940_v10, 0.0 }
 0x3bd   : > { %953 = vst.msk [vmem:[%s1409_s7 + $0x20] sm:$0xff] %vm423_vm0, %v945_v11  ;;  %v946_v13 = vmax.f32 %v938_v12, 0.0 }
 0x3be   : > { %956 = vst.msk [vmem:[%s1409_s7 + $0x38] sm:$0xff] %vm423_vm0, %v948_v61 }
 0x3bf   : > { %954 = vst.msk [vmem:[%s1409_s7 + $0x28] sm:$0xff] %vm423_vm0, %v946_v13 }
 0x3c0 PF: > { %s16_s21 = sadd.s32 1, %s1203_s21  }
 0x3c1   : > { %p13_p4 = scmp.ge.s32.totalorder %s16_s21, 6  }
 0x3c3   :  { %15 = sbr.rel (!%p13_p4) target bundleno = 1 (0x1), region = 74 }

</bundles_post_ra>
